<compile_context>
chip_gen: v7x
topology: tpu7x:2x2x1
jax: 0.10.0
libtpu: 0.0.40
codegen_flags: <defaults>
</compile_context>

<pallas_src>
import functools

import jax
import jax.numpy as jnp
from jax.experimental import pallas as pl
from jax.experimental.pallas import tpu as pltpu


def _actor_kernel(obs_ref, w1_ref, b1_ref, w2_ref, b2_ref, w3_ref, b3_ref,
                  out_ref, *, act_limit):
    # Feature-major tile:
    #   obs_ref: [obs_dim, TB]      out_ref: [act_dim, TB]
    #   w*_ref : [out_feat, in_feat] (PyTorch layout), b*_ref: [out_feat, 1]
    # Every intermediate is [features, TB] -> batch on the lane axis, so all
    # elementwise math and the final store are lane-dense.
    h = jnp.dot(w1_ref[...], obs_ref[...],
                preferred_element_type=jnp.float32) + b1_ref[...]
    h = jnp.maximum(h, 0.0)                                   # [128, TB]

    h = jnp.dot(w2_ref[...], h,
                preferred_element_type=jnp.float32) + b2_ref[...]
    h = jnp.maximum(h, 0.0)                                   # [64, TB]

    h = jnp.dot(w3_ref[...], h,
                preferred_element_type=jnp.float32) + b3_ref[...]  # [act_dim, TB]
    out_ref[...] = (act_limit * jnp.tanh(h)).astype(out_ref.dtype)


def _round_up(x, m):
    return ((x + m - 1) // m) * m


def _batch_tile(b, tb_max=1024):
    """Pick the batch tile (lane axis).

    - b <= 128: one full-extent tile (any size is legal when the block spans
      the whole dim); tiny batches are overhead-dominated anyway.
    - b  > 128: >= 2 tiles so the "parallel" batch axis shards across both
      TensorCores on v7x; each tile is a multiple of 128 lanes, fitted to the
      batch (no pathological padding like 300 -> 512-in-one-tile), capped at
      tb_max to keep per-step work large relative to ~0.35 us step overhead.
    """
    if b <= 128:
        return b
    ntiles = max(2, -(-b // tb_max))
    return min(tb_max, _round_up(-(-b // ntiles), 128))


def actor_forward(obs, params, act_limit):
    """obs: [B, obs_dim] f32. Returns [B, act_dim] f32 (same as the PyTorch Actor)."""
    w1, b1, w2, b2, w3, b3 = params
    b, obs_dim = obs.shape
    act_dim = w3.shape[0]

    tb = _batch_tile(b)
    num_tiles = pl.cdiv(b, tb)      # boundary tile is masked by Pallas; no pad/slice.

    obs_t = obs.T                   # [obs_dim, B]: batch on the 128-lane axis.

    resident = lambda a: pl.BlockSpec(a.shape, lambda i: (0, 0))

    out_t = pl.pallas_call(
        functools.partial(_actor_kernel, act_limit=float(act_limit)),
        out_shape=jax.ShapeDtypeStruct((act_dim, b), jnp.float32),
        grid=(num_tiles,),
        in_specs=[
            pl.BlockSpec((obs_dim, tb), lambda i: (0, i)),   # obs: tiled over batch lanes
            resident(w1), resident(b1),                      # params: VMEM-resident
            resident(w2), resident(b2),
            resident(w3), resident(b3),
        ],
        out_specs=pl.BlockSpec((act_dim, tb), lambda i: (0, i)),
        compiler_params=pltpu.CompilerParams(
            dimension_semantics=("parallel",)),
    )(obs_t, w1, b1, w2, b2, w3, b3)

    return out_t.T                  # [B, act_dim]


def init_actor_params(key, obs_dim, act_dim):
    """Deterministic PyTorch-style Linear init (U[-1/sqrt(fan_in), 1/sqrt(fan_in)]).
    Weights in PyTorch's native [out_features, in_features] layout; biases [out, 1]; f32."""
    def linear(key, fan_in, fan_out):
        kw, kb = jax.random.split(key)
        bound = 1.0 / jnp.sqrt(fan_in)
        w = jax.random.uniform(kw, (fan_out, fan_in), jnp.float32, -bound, bound)
        b = jax.random.uniform(kb, (fan_out, 1), jnp.float32, -bound, bound)
        return w, b

    k1, k2, k3 = jax.random.split(key, 3)
    w1, b1 = linear(k1, obs_dim, 128)
    w2, b2 = linear(k2, 128, 64)
    w3, b3 = linear(k3, 64, act_dim)
    return (w1, b1, w2, b2, w3, b3)


def actor_reference(obs, params, act_limit):
    """Pure-JAX f32 reference (mirrors the PyTorch module)."""
    w1, b1, w2, b2, w3, b3 = params
    x = jnp.maximum(obs @ w1.T + b1.T, 0.0)
    x = jnp.maximum(x @ w2.T + b2.T, 0.0)
    return act_limit * jnp.tanh(x @ w3.T + b3.T)


if __name__ == "__main__":
    obs_dim, act_dim, act_limit = 8, 4, 2.0

    key = jax.random.PRNGKey(0)
    k_params, k_obs1, k_obs2 = jax.random.split(key, 3)
    params = init_actor_params(k_params, obs_dim, act_dim)

    # Small (spec-sized) batch: B=2 -> single full-extent tile.
    obs_small = jax.random.normal(k_obs1, (2, obs_dim), dtype=jnp.float32)
    out_small = jax.block_until_ready(actor_forward(obs_small, params, act_limit))
    ref_small = actor_reference(obs_small, params, act_limit)
    assert out_small.shape == (2, act_dim)
    assert jnp.allclose(out_small, ref_small, atol=1e-2, rtol=1e-2), "mismatch (small batch)"

    # Larger batch: 2 grid steps (tb=256), second tile boundary-masked (no pad/slice).
    obs_big = jax.random.normal(k_obs2, (300, obs_dim), dtype=jnp.float32)
    out_big = jax.block_until_ready(actor_forward(obs_big, params, act_limit))
    ref_big = actor_reference(obs_big, params, act_limit)
    assert out_big.shape == (300, act_dim)
    assert jnp.allclose(out_big, ref_big, atol=1e-2, rtol=1e-2), "mismatch (large batch)"

    print("KERNEL_OK")
</pallas_src>

<mosaic_0001>
module attributes {stable_mosaic.version = 11 : i64} {
  func.func @_actor_kernel(%arg0: i32, %arg1: memref<8x2xf32, #tpu.memory_space<vmem>>, %arg2: memref<128x8xf32, #tpu.memory_space<vmem>>, %arg3: memref<128x1xf32, #tpu.memory_space<vmem>>, %arg4: memref<64x128xf32, #tpu.memory_space<vmem>>, %arg5: memref<64x1xf32, #tpu.memory_space<vmem>>, %arg6: memref<4x64xf32, #tpu.memory_space<vmem>>, %arg7: memref<4x1xf32, #tpu.memory_space<vmem>>, %arg8: memref<4x2xf32, #tpu.memory_space<vmem>>) attributes {dimension_semantics = [#tpu.dimension_semantics<parallel>], iteration_bounds = array<i64: 1>, scalar_prefetch = 0 : i64, scratch_operands = 0 : i64, tpu.core_type = #tpu.core_type<tc>, window_params = [{transform_indices = @transform_0, window_bounds = array<i64: 8, 2>}, {pipeline_mode = #tpu.pipeline_mode<synchronous>, transform_indices = @transform_1, window_bounds = array<i64: 128, 8>}, {pipeline_mode = #tpu.pipeline_mode<synchronous>, transform_indices = @transform_2, window_bounds = array<i64: 128, 1>}, {pipeline_mode = #tpu.pipeline_mode<synchronous>, transform_indices = @transform_3, window_bounds = array<i64: 64, 128>}, {pipeline_mode = #tpu.pipeline_mode<synchronous>, transform_indices = @transform_4, window_bounds = array<i64: 64, 1>}, {pipeline_mode = #tpu.pipeline_mode<synchronous>, transform_indices = @transform_5, window_bounds = array<i64: 4, 64>}, {pipeline_mode = #tpu.pipeline_mode<synchronous>, transform_indices = @transform_6, window_bounds = array<i64: 4, 1>}, {transform_indices = @transform_7, window_bounds = array<i64: 4, 2>}]} {
    %c0 = arith.constant 0 : index
    %c0_0 = arith.constant 0 : index
    %0 = vector.load %arg2[%c0, %c0_0] : memref<128x8xf32, #tpu.memory_space<vmem>>, vector<128x8xf32>
    %c0_1 = arith.constant 0 : index
    %c0_2 = arith.constant 0 : index
    %1 = vector.load %arg1[%c0_1, %c0_2] : memref<8x2xf32, #tpu.memory_space<vmem>>, vector<8x2xf32>
    %cst = arith.constant dense<0.000000e+00> : vector<128x2xf32>
    %2 = tpu.matmul %0, %1, %cst {dimension_numbers = #tpu.dot_dimension_numbers<[1], [0], [0], [1], [0, 0, 1, 1], [], []>} : vector<128x8xf32>, vector<8x2xf32>, vector<128x2xf32> -> vector<128x2xf32>
    %c0_3 = arith.constant 0 : index
    %c0_4 = arith.constant 0 : index
    %3 = vector.load %arg3[%c0_3, %c0_4] : memref<128x1xf32, #tpu.memory_space<vmem>>, vector<128x1xf32>
    %4 = vector.broadcast %3 : vector<128x1xf32> to vector<128x2xf32>
    %5 = arith.addf %2, %4 : vector<128x2xf32>
    %cst_5 = arith.constant 0.000000e+00 : f32
    %6 = vector.broadcast %cst_5 : f32 to vector<128x2xf32>
    %7 = arith.maximumf %5, %6 : vector<128x2xf32>
    %c0_6 = arith.constant 0 : index
    %c0_7 = arith.constant 0 : index
    %8 = vector.load %arg4[%c0_6, %c0_7] : memref<64x128xf32, #tpu.memory_space<vmem>>, vector<64x128xf32>
    %cst_8 = arith.constant dense<0.000000e+00> : vector<64x2xf32>
    %9 = tpu.matmul %8, %7, %cst_8 {dimension_numbers = #tpu.dot_dimension_numbers<[1], [0], [0], [1], [0, 0, 1, 1], [], []>} : vector<64x128xf32>, vector<128x2xf32>, vector<64x2xf32> -> vector<64x2xf32>
    %c0_9 = arith.constant 0 : index
    %c0_10 = arith.constant 0 : index
    %10 = vector.load %arg5[%c0_9, %c0_10] : memref<64x1xf32, #tpu.memory_space<vmem>>, vector<64x1xf32>
    %11 = vector.broadcast %10 : vector<64x1xf32> to vector<64x2xf32>
    %12 = arith.addf %9, %11 : vector<64x2xf32>
    %cst_11 = arith.constant 0.000000e+00 : f32
    %13 = vector.broadcast %cst_11 : f32 to vector<64x2xf32>
    %14 = arith.maximumf %12, %13 : vector<64x2xf32>
    %c0_12 = arith.constant 0 : index
    %c0_13 = arith.constant 0 : index
    %15 = vector.load %arg6[%c0_12, %c0_13] : memref<4x64xf32, #tpu.memory_space<vmem>>, vector<4x64xf32>
    %cst_14 = arith.constant dense<0.000000e+00> : vector<4x2xf32>
    %16 = tpu.matmul %15, %14, %cst_14 {dimension_numbers = #tpu.dot_dimension_numbers<[1], [0], [0], [1], [0, 0, 1, 1], [], []>} : vector<4x64xf32>, vector<64x2xf32>, vector<4x2xf32> -> vector<4x2xf32>
    %c0_15 = arith.constant 0 : index
    %c0_16 = arith.constant 0 : index
    %17 = vector.load %arg7[%c0_15, %c0_16] : memref<4x1xf32, #tpu.memory_space<vmem>>, vector<4x1xf32>
    %18 = vector.broadcast %17 : vector<4x1xf32> to vector<4x2xf32>
    %19 = arith.addf %16, %18 : vector<4x2xf32>
    %20 = math.tanh %19 : vector<4x2xf32>
    %cst_17 = arith.constant 2.000000e+00 : f32
    %21 = vector.broadcast %cst_17 : f32 to vector<4x2xf32>
    %22 = arith.mulf %21, %20 : vector<4x2xf32>
    %c0_18 = arith.constant 0 : index
    %c0_19 = arith.constant 0 : index
    %23 = vector.load %arg8[%c0_18, %c0_19] : memref<4x2xf32, #tpu.memory_space<vmem>>, vector<4x2xf32>
    tpu.vector_store %arg8[%c0_18, %c0_19], %22 {strides = array<i32>} : memref<4x2xf32, #tpu.memory_space<vmem>>, vector<4x2xf32>,
    return
  }
  func.func @transform_0(%arg0: i32) -> (i32, i32) {
    %c0_i32 = arith.constant 0 : i32
    %c0_i32_0 = arith.constant 0 : i32
    return %c0_i32, %arg0 : i32, i32
  }
  func.func @transform_1(%arg0: i32) -> (i32, i32) {
    %c0_i32 = arith.constant 0 : i32
    %c0_i32_0 = arith.constant 0 : i32
    %c0_i32_1 = arith.constant 0 : i32
    return %c0_i32, %c0_i32_0 : i32, i32
  }
  func.func @transform_2(%arg0: i32) -> (i32, i32) {
    %c0_i32 = arith.constant 0 : i32
    %c0_i32_0 = arith.constant 0 : i32
    %c0_i32_1 = arith.constant 0 : i32
    return %c0_i32, %c0_i32_0 : i32, i32
  }
  func.func @transform_3(%arg0: i32) -> (i32, i32) {
    %c0_i32 = arith.constant 0 : i32
    %c0_i32_0 = arith.constant 0 : i32
    %c0_i32_1 = arith.constant 0 : i32
    return %c0_i32, %c0_i32_0 : i32, i32
  }
  func.func @transform_4(%arg0: i32) -> (i32, i32) {
    %c0_i32 = arith.constant 0 : i32
    %c0_i32_0 = arith.constant 0 : i32
    %c0_i32_1 = arith.constant 0 : i32
    return %c0_i32, %c0_i32_0 : i32, i32
  }
  func.func @transform_5(%arg0: i32) -> (i32, i32) {
    %c0_i32 = arith.constant 0 : i32
    %c0_i32_0 = arith.constant 0 : i32
    %c0_i32_1 = arith.constant 0 : i32
    return %c0_i32, %c0_i32_0 : i32, i32
  }
  func.func @transform_6(%arg0: i32) -> (i32, i32) {
    %c0_i32 = arith.constant 0 : i32
    %c0_i32_0 = arith.constant 0 : i32
    %c0_i32_1 = arith.constant 0 : i32
    return %c0_i32, %c0_i32_0 : i32, i32
  }
  func.func @transform_7(%arg0: i32) -> (i32, i32) {
    %c0_i32 = arith.constant 0 : i32
    %c0_i32_0 = arith.constant 0 : i32
    return %c0_i32, %arg0 : i32, i32
  }
}

</mosaic_0001>

<bundles_post_ra>
// kernel: tpu_custom_call.1
= control target key start
LH: loop header
LB: loop body
LE: loop exit
PB: predicated region body
PF: predicated region fallthrough
CT: control target
= control target key end

     0   :  { %vm139_vm0 = vcmask 64512   ;;  %v815_v3 = vmov 0   ;;  %vm817_vm1 = vmmov 0   ;;  %vm525_vm2 = vcmask 523264   ;;  %s1031_s0 = inlined_call_operand.vmem [shape: f32[8,2], index: 0, kind: input, shape index: {}]   ;;  %s1032_s1 = inlined_call_operand.vmem [shape: f32[128,8], index: 1, kind: input, shape index: {}]   ;;  %s1033_s2 = inlined_call_operand.vmem [shape: f32[128,1], index: 2, kind: input, shape index: {}]   ;;  %s1034_s4 = inlined_call_operand.vmem [shape: f32[64,1], index: 4, kind: input, shape index: {}]   ;;  %s1035_s6 = inlined_call_operand.vmem [shape: f32[4,1], index: 6, kind: input, shape index: {}]   ;;  %s1036_s3 = inlined_call_operand.vmem [shape: f32[64,128], index: 3, kind: input, shape index: {}]   ;;  %s1037_s5 = inlined_call_operand.vmem [shape: f32[4,64], index: 5, kind: input, shape index: {}]   ;;  %s1038_s7 = inlined_call_operand.vmem [shape: f32[4,2], index: 7, kind: output, shape index: {}]  }
   0x1   :  { %v42_v0 = vld [vmem:[%s1031_s0] sm:$0xff]  ;;  %v27_v2 = vld [vmem:[%s1032_s1 + $0x8] sm:$0xff]  ;;  %811 = vset.pattern.permute.xlu0 %v815_v3  ;;  %812 = vset.pattern.permute.xlu1 %v815_v3  ;;  %v28_v4 = vld [vmem:[%s1032_s1 + $0x10] sm:$0xff]  ;;  %vm601_vm3 = vcmask 11264  }
   0x2   :  { %v26_v1 = vld [vmem:[%s1032_s1] sm:$0xff]  ;;  %674 = vmatprep.subr.mxu0 %v42_v0  ;;  %v29_v5 = vld [vmem:[%s1032_s1 + $0x18] sm:$0xff]  ;;  %v45_v8 = vld [vmem:[%s1033_s2 + $0x10] sm:$0xff] }
   0x3   :  { %676 = vmatprep.mubr.msk.f32.mxu0 %vm139_vm0, %v26_v1  ;;  %675 = vmatpush3.msra.mxu0 %v42_v0  ;;  %v30_v6 = vld [vmem:[%s1032_s1 + $0x20] sm:$0xff]  ;;  %v44_v9 = vld [vmem:[%s1033_s2 + $0x8] sm:$0xff]  ;;  %v46_v11 = vld [vmem:[%s1033_s2 + $0x18] sm:$0xff] }
   0x4   :  { %677 = vmatmul.mubr.msk.f32.vlgmr.msra.gmra.mrb[0].mxu0 %vm139_vm0, %v27_v2  ;;  %v43_v7 = vld [vmem:[%s1033_s2] sm:$0xff]  ;;  %71 = vperm.xlu1 %812, %v45_v8   ;;  %v31_v10 = vld [vmem:[%s1032_s1 + $0x28] sm:$0xff]  ;;  %v32_v12 = vld [vmem:[%s1032_s1 + $0x30] sm:$0xff] }
   0x5   :  { %679 = vmatprep.mubr.msk.f32.mxu0 %vm139_vm0, %v28_v4  ;;  %61 = vperm.xlu0 %811, %v43_v7   ;;  %v47_v13 = vld [vmem:[%s1033_s2 + $0x20] sm:$0xff]  ;;  %v33_v14 = vld [vmem:[%s1032_s1 + $0x38] sm:$0xff]  ;;  %v48_v15 = vld [vmem:[%s1033_s2 + $0x28] sm:$0xff] }
   0x6   :  { %v34_v16 = vld [vmem:[%s1032_s1 + $0x40] sm:$0xff]  ;;  %v49_v17 = vld [vmem:[%s1033_s2 + $0x30] sm:$0xff]  ;;  %v35_v18 = vld [vmem:[%s1032_s1 + $0x48] sm:$0xff] }
   0x7   :  { %v50_v19 = vld [vmem:[%s1033_s2 + $0x38] sm:$0xff]  ;;  %v36_v20 = vld [vmem:[%s1032_s1 + $0x50] sm:$0xff]  ;;  %v51_v21 = vld [vmem:[%s1033_s2 + $0x40] sm:$0xff] }
   0x8   :  { %680 = vmatmul.mubr.msk.f32.gmra.mrb[2].mxu0 %vm139_vm0, %v29_v5  ;;  %76 = vperm.xlu1 %812, %v46_v11   ;;  %v37_v22 = vld [vmem:[%s1032_s1 + $0x58] sm:$0xff]  ;;  %v52_v23 = vld [vmem:[%s1033_s2 + $0x48] sm:$0xff]  ;;  %v38_v24 = vld [vmem:[%s1032_s1 + $0x60] sm:$0xff] }
   0x9   :  { %682 = vmatprep.mubr.msk.f32.mxu0 %vm139_vm0, %v30_v6  ;;  %66 = vperm.xlu0 %811, %v44_v9   ;;  %v53_v25 = vld [vmem:[%s1033_s2 + $0x50] sm:$0xff]  ;;  %v39_v26 = vld [vmem:[%s1032_s1 + $0x68] sm:$0xff]  ;;  %v54_v27 = vld [vmem:[%s1033_s2 + $0x58] sm:$0xff] }
   0xa   :  { %v40_v28 = vld [vmem:[%s1032_s1 + $0x70] sm:$0xff]  ;;  %v55_v29 = vld [vmem:[%s1033_s2 + $0x60] sm:$0xff]  ;;  %v41_v30 = vld [vmem:[%s1032_s1 + $0x78] sm:$0xff] }
   0xb   :  { %v56_v31 = vld [vmem:[%s1033_s2 + $0x68] sm:$0xff]  ;;  %v57_v32 = vld [vmem:[%s1033_s2 + $0x70] sm:$0xff]  ;;  %v58_v33 = vld [vmem:[%s1033_s2 + $0x78] sm:$0xff] }
   0xc   :  { %683 = vmatmul.mubr.msk.f32.gmra.mrb[4].mxu0 %vm139_vm0, %v31_v10  ;;  %86 = vperm.xlu1 %812, %v48_v15   ;;  %v357_v34 = vld [vmem:[%s1034_s4] sm:$0xff]  ;;  %v358_v35 = vld [vmem:[%s1034_s4 + $0x8] sm:$0xff]  ;;  %v359_v36 = vld [vmem:[%s1034_s4 + $0x10] sm:$0xff] }
   0xd   :  { %685 = vmatprep.mubr.msk.f32.mxu0 %vm139_vm0, %v32_v12  ;;  %81 = vperm.xlu0 %811, %v47_v13   ;;  %v360_v37 = vld [vmem:[%s1034_s4 + $0x18] sm:$0xff]  ;;  %v361_v38 = vld [vmem:[%s1034_s4 + $0x20] sm:$0xff]  ;;  %v362_v39 = vld [vmem:[%s1034_s4 + $0x28] sm:$0xff] }
   0xe   :  { %v363_v40 = vld [vmem:[%s1034_s4 + $0x30] sm:$0xff]  ;;  %v364_v41 = vld [vmem:[%s1034_s4 + $0x38] sm:$0xff]  ;;  %v519_v42 = vld [vmem:[%s1035_s6] sm:$0xf] }
   0xf   :  { %v349_v43 = vld [vmem:[%s1036_s3] sm:$0xff] }
  0x10   :  { %686 = vmatmul.mubr.msk.f32.gmra.mrb[6].mxu0 %vm139_vm0, %v33_v14  ;;  %96 = vperm.xlu1 %812, %v50_v19  }
  0x11   :  { %688 = vmatprep.mubr.msk.f32.mxu0 %vm139_vm0, %v34_v16  ;;  %91 = vperm.xlu0 %811, %v49_v17  }
  0x12   :  { %732 = vmatprep.mubr.f32.mxu1 %v349_v43 }
  0x14   :  { %689 = vmatmul.mubr.msk.f32.gmra.mrb[8].mxu0 %vm139_vm0, %v35_v18  ;;  %106 = vperm.xlu1 %812, %v52_v23  }
  0x15   :  { %691 = vmatprep.mubr.msk.f32.mxu0 %vm139_vm0, %v36_v20  ;;  %101 = vperm.xlu0 %811, %v51_v21  }
  0x18   :  { %692 = vmatmul.mubr.msk.f32.gmra.mrb[10].mxu0 %vm139_vm0, %v37_v22  ;;  %116 = vperm.xlu1 %812, %v54_v27  }
  0x19   :  { %694 = vmatprep.mubr.msk.f32.mxu0 %vm139_vm0, %v38_v24  ;;  %111 = vperm.xlu0 %811, %v53_v25  }
  0x1c   :  { %695 = vmatmul.mubr.msk.f32.gmra.mrb[12].mxu0 %vm139_vm0, %v39_v26  ;;  %126 = vperm.xlu1 %812, %v56_v31  }
  0x1d   :  { %697 = vmatprep.mubr.msk.f32.mxu0 %vm139_vm0, %v40_v28  ;;  %121 = vperm.xlu0 %811, %v55_v29  }
  0x20   :  { %698 = vmatmul.mubr.msk.f32.gmra.mrb[14].mxu0 %vm139_vm0, %v41_v30  ;;  %136 = vperm.xlu1 %812, %v58_v33  }
  0x21   :  { %131 = vperm.xlu0 %811, %v57_v32  }
  0x24   :  { %372 = vperm.xlu1 %812, %v358_v35  }
  0x25   :  { %367 = vperm.xlu0 %811, %v357_v34  }
  0x28   :  { %382 = vperm.xlu1 %812, %v360_v37  }
  0x29   :  { %377 = vperm.xlu0 %811, %v359_v36  }
  0x2c   :  { %392 = vperm.xlu1 %812, %v362_v39  }
  0x2d   :  { %387 = vperm.xlu0 %811, %v361_v38  }
  0x30   :  { %402 = vperm.xlu1 %812, %v364_v41  }
  0x31   :  { %397 = vperm.xlu0 %811, %v363_v40  }
  0x35   :  { %522 = vperm.xlu0 %811, %v519_v42  }
  0x83   :  { %v72_v44 = vpop.permute.xlu1 %71 }
  0x84   :  { %v62_v45 = vpop.permute.xlu0 %61 }
  0x87   :  { %v77_v46 = vpop.permute.xlu1 %76 }
  0x88   :  { %v67_v47 = vpop.permute.xlu0 %66 }
  0x8b   :  { %v87_v48 = vpop.permute.xlu1 %86 }
  0x8c   :  { %v82_v49 = vpop.permute.xlu0 %81 }
  0x8f   :  { %v97_v55 = vpop.permute.xlu1 %96 }
  0x90   :  { %v92_v58 = vpop.permute.xlu0 %91 }
  0x93   :  { %v107_v4 = vpop.permute.xlu1 %106 }
  0x94   :  { %v102_v7 = vpop.permute.xlu0 %101 }
  0x97   :  { %v117_v16 = vpop.permute.xlu1 %116 }
  0x98   :  { %v112_v19 = vpop.permute.xlu0 %111 }
  0x9b   :  { %v127_v29 = vpop.permute.xlu1 %126 }
  0x9c   :  { %v122_v32 = vpop.permute.xlu0 %121 }
  0x9f   :  { %v137_v41 = vpop.permute.xlu1 %136 }
  0xd7   :  { %v678_v50 = vpop.f32.mrb[0].mxu0 }
  0xd8   :  { %v260_v51 = vadd.f32 %v678_v50, %v67_v47  ;;  %v254_v52 = vpop.f32.mrb[1].mxu0 }
  0xd9   :  { %v255_v53 = vadd.f32 %v254_v52, %v62_v45  ;;  %v350_v52 = vld [vmem:[%s1036_s3 + $0x8] sm:$0xff] }
  0xda   :  { %v334_v54 = vmax.f32 %v260_v51, 0.0 }
  0xdb   :  { %v333_v56 = vmax.f32 %v255_v53, 0.0  ;;  %v681_v57 = vpop.f32.mrb[2].mxu0  ;;  %v351_v53 = vld [vmem:[%s1036_s3 + $0x10] sm:$0xff] }
  0xdc   :  { %v270_v59 = vadd.f32 %v681_v57, %v77_v46  ;;  %v264_v60 = vpop.f32.mrb[3].mxu0  ;;  %v355_v57 = vld [vmem:[%s1036_s3 + $0x30] sm:$0xff] }
  0xdd   :  { %v265_v61 = vadd.f32 %v264_v60, %v72_v44  ;;  %v763_v62 = vpack.c.bf16 %v334_v54, %v333_v56  ;;  %v132_v44 = vpop.permute.xlu0 %131  ;;  %v352_v54 = vld [vmem:[%s1036_s3 + $0x18] sm:$0xff]  ;;  %v354_v56 = vld [vmem:[%s1036_s3 + $0x28] sm:$0xff]  ;;  %v818_v60 = vmov 0.0  }
  0xde   :  { %v336_v63 = vmax.f32 %v270_v59, 0.0  ;;  %v816_v59 = vmov 0.0|0.0   ;;  %760 = vmatprep.mubr.msk.f32.mxu0 %vm817_vm1, %v818_v60 }
  0xdf   :  { %v335_v0 = vmax.f32 %v265_v61, 0.0  ;;  %v684_v1 = vpop.f32.mrb[4].mxu0  ;;  %764 = vmatprep.subr.bf16.mxu1 %v763_v62  ;;  %795 = vmatprep.subr.bf16.mxu0 %v816_v59  ;;  %v373_v61 = vpop.permute.xlu1 %372 }
  0xe0   :  { %v280_v2 = vadd.f32 %v684_v1, %v87_v48  ;;  %v274_v3 = vpop.f32.mrb[5].mxu0  ;;  %766 = vmatpush3.bf16.msra.mxu1 %v763_v62 }
  0xe1   :  { %v767_v5 = vpack.c.bf16 %v336_v63, %v335_v0  ;;  %v275_v6 = vadd.f32 %v274_v3, %v82_v49  ;;  %v368_v62 = vpop.permute.xlu0 %367 }
  0xe2   :  { %v338_v8 = vmax.f32 %v280_v2, 0.0 }
  0xe3   :  { %v337_v9 = vmax.f32 %v275_v6, 0.0  ;;  %v687_v10 = vpop.f32.mrb[6].mxu0  ;;  %768 = vmatprep.subr.bf16.mxu1 %v767_v5  ;;  %v383_v63 = vpop.permute.xlu1 %382 }
  0xe4   :  { %v290_v11 = vadd.f32 %v687_v10, %v97_v55  ;;  %v284_v12 = vpop.f32.mrb[7].mxu0  ;;  %770 = vmatpush3.bf16.msra.mxu1 %v767_v5  ;;  %v353_v55 = vld [vmem:[%s1036_s3 + $0x20] sm:$0xff] }
  0xe5   :  { %v771_v13 = vpack.c.bf16 %v338_v8, %v337_v9  ;;  %v285_v14 = vadd.f32 %v284_v12, %v92_v58  ;;  %v356_v58 = vld [vmem:[%s1036_s3 + $0x38] sm:$0xff]  ;;  %v378_v1 = vpop.permute.xlu0 %377 }
  0xe6   :  { %v340_v15 = vmax.f32 %v290_v11, 0.0 }
  0xe7   :  { %v339_v17 = vmax.f32 %v285_v14, 0.0  ;;  %v690_v18 = vpop.f32.mrb[8].mxu0  ;;  %772 = vmatprep.subr.bf16.mxu1 %v771_v13  ;;  %v393_v10 = vpop.permute.xlu1 %392 }
  0xe8   :  { %v300_v20 = vadd.f32 %v690_v18, %v107_v4  ;;  %v294_v21 = vpop.f32.mrb[9].mxu0  ;;  %774 = vmatpush3.bf16.msra.mxu1 %v771_v13 }
  0xe9   :  { %v775_v22 = vpack.c.bf16 %v340_v15, %v339_v17  ;;  %v295_v23 = vadd.f32 %v294_v21, %v102_v7  ;;  %v388_v13 = vpop.permute.xlu0 %387 }
  0xea   :  { %v342_v24 = vmax.f32 %v300_v20, 0.0 }
  0xeb   :  { %v341_v25 = vmax.f32 %v295_v23, 0.0  ;;  %v693_v26 = vpop.f32.mrb[10].mxu0  ;;  %776 = vmatprep.subr.bf16.mxu1 %v775_v22 }
  0xec   :  { %v310_v27 = vadd.f32 %v693_v26, %v117_v16  ;;  %v304_v28 = vpop.f32.mrb[11].mxu0  ;;  %778 = vmatpush3.bf16.msra.mxu1 %v775_v22  ;;  %v403_v22 = vpop.permute.xlu1 %402 }
  0xed   :  { %v779_v30 = vpack.c.bf16 %v342_v24, %v341_v25  ;;  %v305_v31 = vadd.f32 %v304_v28, %v112_v19  ;;  %v398_v25 = vpop.permute.xlu0 %397 }
  0xee   :  { %v344_v33 = vmax.f32 %v310_v27, 0.0 }
  0xef   :  { %v343_v34 = vmax.f32 %v305_v31, 0.0  ;;  %v696_v35 = vpop.f32.mrb[12].mxu0  ;;  %780 = vmatprep.subr.bf16.mxu1 %v779_v30 }
  0xf0   :  { %v320_v36 = vadd.f32 %v696_v35, %v127_v29  ;;  %v314_v37 = vpop.f32.mrb[13].mxu0  ;;  %782 = vmatpush3.bf16.msra.mxu1 %v779_v30 }
  0xf1   :  { %v783_v38 = vpack.c.bf16 %v344_v33, %v343_v34  ;;  %v315_v39 = vadd.f32 %v314_v37, %v122_v32  ;;  %v518_v33 = vld [vmem:[%s1037_s5] sm:$0xf]  ;;  %v523_v34 = vpop.permute.xlu0 %522 }
  0xf2   :  { %v346_v40 = vmax.f32 %v320_v36, 0.0 }
  0xf3   :  { %v345_v42 = vmax.f32 %v315_v39, 0.0  ;;  %v699_v43 = vpop.f32.mrb[14].mxu0  ;;  %784 = vmatprep.subr.bf16.mxu1 %v783_v38 }
  0xf4   :  { %v330_v45 = vadd.f32 %v699_v43, %v137_v41  ;;  %v324_v46 = vpop.f32.mrb[15].mxu0  ;;  %786 = vmatpush3.bf16.msra.mxu1 %v783_v38 }
  0xf5   :  { %v787_v47 = vpack.c.bf16 %v346_v40, %v345_v42  ;;  %v325_v48 = vadd.f32 %v324_v46, %v132_v44 }
  0xf6   :  { %v348_v49 = vmax.f32 %v330_v45, 0.0 }
  0xf7   :  { %v347_v50 = vmax.f32 %v325_v48, 0.0  ;;  %788 = vmatprep.subr.bf16.mxu1 %v787_v47 }
  0xf8   :  { %790 = vmatpush3.bf16.msra.mxu1 %v787_v47 }
  0xf9   :  { %v791_v51 = vpack.c.bf16 %v348_v49, %v347_v50 }
  0xfb   :  { %792 = vmatprep.subr.bf16.mxu1 %v791_v51 }
  0xfc   :  { %794 = vmatpush3.bf16.msra.mxu1 %v791_v51 }
  0xff   :  { %733 = vmatmul.mubr.f32.vlgmr.msra.gmra.mrb[0].mxu1 %v350_v52 }
 0x100   :  { %735 = vmatprep.mubr.f32.mxu1 %v351_v53 }
 0x103   :  { %736 = vmatmul.mubr.f32.gmra.mrb[2].mxu1 %v352_v54 }
 0x104   :  { %738 = vmatprep.mubr.f32.mxu1 %v353_v55 }
 0x107   :  { %739 = vmatmul.mubr.f32.gmra.mrb[4].mxu1 %v354_v56 }
 0x108   :  { %741 = vmatprep.mubr.f32.mxu1 %v355_v57 }
 0x10b   :  { %742 = vmatmul.mubr.f32.gmra.mrb[6].mxu1 %v356_v58 }
 0x1d2   :  { %v734_v0 = vpop.f32.mrb[0].mxu1 }
 0x1d3   :  { %v477_v2 = vadd.f32 %v734_v0, %v373_v61  ;;  %v471_v3 = vpop.f32.mrb[1].mxu1 }
 0x1d4   :  { %v472_v4 = vadd.f32 %v471_v3, %v368_v62 }
 0x1d5   :  { %v511_v5 = vmax.f32 %v477_v2, 0.0 }
 0x1d6   :  { %v510_v6 = vmax.f32 %v472_v4, 0.0  ;;  %v737_v7 = vpop.f32.mrb[2].mxu1 }
 0x1d7   :  { %v487_v8 = vadd.f32 %v737_v7, %v383_v63  ;;  %v481_v9 = vpop.f32.mrb[3].mxu1 }
 0x1d8   :  { %v796_v11 = vpack.c.bf16 %v511_v5, %v510_v6  ;;  %v482_v12 = vadd.f32 %v481_v9, %v378_v1 }
 0x1d9   :  { %v513_v14 = vmax.f32 %v487_v8, 0.0 }
 0x1da   :  { %v512_v15 = vmax.f32 %v482_v12, 0.0  ;;  %v740_v16 = vpop.f32.mrb[4].mxu1  ;;  %797 = vmatpush3.bf16.msra.mxu0 %v796_v11 }
 0x1db   :  { %v497_v17 = vadd.f32 %v740_v16, %v393_v10  ;;  %v491_v18 = vpop.f32.mrb[5].mxu1  ;;  %798 = vmatprep.subr.bf16.mxu0 %v816_v59 }
 0x1dc   :  { %v799_v19 = vpack.c.bf16 %v513_v14, %v512_v15  ;;  %v492_v20 = vadd.f32 %v491_v18, %v388_v13 }
 0x1dd   :  { %v515_v21 = vmax.f32 %v497_v17, 0.0 }
 0x1de   :  { %v514_v23 = vmax.f32 %v492_v20, 0.0  ;;  %v743_v24 = vpop.f32.mrb[6].mxu1  ;;  %800 = vmatpush3.bf16.msra.mxu0 %v799_v19 }
 0x1df   :  { %v507_v26 = vadd.f32 %v743_v24, %v403_v22  ;;  %v501_v27 = vpop.f32.mrb[7].mxu1  ;;  %801 = vmatprep.subr.bf16.mxu0 %v816_v59 }
 0x1e0   :  { %v802_v28 = vpack.c.bf16 %v515_v21, %v514_v23  ;;  %v502_v29 = vadd.f32 %v501_v27, %v398_v25 }
 0x1e1   :  { %v517_v30 = vmax.f32 %v507_v26, 0.0 }
 0x1e2   :  { %v516_v31 = vmax.f32 %v502_v29, 0.0  ;;  %803 = vmatpush3.bf16.msra.mxu0 %v802_v28 }
 0x1e3   :  { %804 = vmatprep.subr.bf16.mxu0 %v816_v59 }
 0x1e4   :  { %v805_v32 = vpack.c.bf16 %v517_v30, %v516_v31 }
 0x1e6   :  { %806 = vmatpush3.bf16.msra.mxu0 %v805_v32 }
 0x1e9   :  { %761 = vmatmul.mubr.msk.f32.vlgmr.msra.gmra.mrb[16].mxu0 %vm525_vm2, %v518_v33 }
 0x2bc   :  { %v595_v35 = vpop.f32.mrb[16].mxu0 }
 0x2bd   :  { %v596_v36 = vadd.f32 %v595_v35, %v523_v34  ;;  %v762_v37 = vpop.f32.mrb[17].mxu0 }
 0x2bf   :  { %813 = vtanh.f32 %v596_v36 }
 0x2c9   :  { %v814_v38 = vpop.eup %813 }
 0x2ca   :  { %v600_v39 = vmul.f32 2.0, %v814_v38 }
 0x2cc   :  { %602 = vst.msk [vmem:[%s1038_s7] sm:$0xf] %vm601_vm3, %v600_v39 }

</bundles_post_ra>
